<compile_context>
chip_gen: v5e
topology: v5e:2x2
jax: 0.10.0
libtpu: 0.0.40
codegen_flags: <defaults>
</compile_context>

<pallas_src>
import jax
import jax.numpy as jnp
from jax import lax
from jax.experimental import pallas as pl
from jax.experimental.pallas import tpu as pltpu


# -----------------------------------------------------------------------------
# Kernel: one (batch, time-tile) block == three MXU dots + bias add.
#   x_ref : (1, C, tt)    current activation tile, compute dtype
#   xh_ref: (1, C, hw)    halo chunk ending exactly where this tile starts
#   w_ref : (3, s*O, C)   polyphase-folded weights per delay d=0,1,2 (VMEM resident)
#   b_ref : (s*O, 1)      phase-tiled bias, f32 (VMEM resident)
#   o_ref : (1, s*O, tt)  phase-major output: [p*O + o, q] = out[o, q*s + p]
# -----------------------------------------------------------------------------
def _poly_conv_kernel(x_ref, xh_ref, w_ref, b_ref, o_ref):
    t = pl.program_id(1)

    x = x_ref[0]                                   # (C, tt)
    halo = xh_ref[0]                               # (C, hw)
    prev = halo[:, -2:]                            # two columns just before this tile
    prev = jnp.where(t > 0, prev, jnp.zeros_like(prev))   # left zero-pad at seq start

    # Shifted operands built in-kernel (cheap lane shifts, hidden under MXU work).
    x_d1 = jnp.concatenate([prev[:, 1:2], x[:, :-1]], axis=1)   # x[:, q-1]
    x_d2 = jnp.concatenate([prev,          x[:, :-2]], axis=1)  # x[:, q-2]

    acc = jnp.dot(w_ref[0], x, preferred_element_type=jnp.float32)
    acc = acc + jnp.dot(w_ref[1], x_d1, preferred_element_type=jnp.float32)
    acc = acc + jnp.dot(w_ref[2], x_d2, preferred_element_type=jnp.float32)
    o_ref[0] = (acc + b_ref[...]).astype(o_ref.dtype)


def _fold_weights(weight, stride):
    """Fold Conv1d weight (O, C, 2s+1) into per-delay polyphase matrices (3, s*O, C).

    out[o, q*s + p] = sum_{d=0..2} sum_c Wfold[d, p*O + o, c] * x[c, q - d]
    (x[q-d] == 0 for q < d) == nearest-upsample by s, left-pad 2s zeros, then
    cross-correlate with `weight` (PyTorch Conv1d convention).
    """
    O, C, K = weight.shape
    s = stride
    assert K == 2 * s + 1
    d0, d1, d2 = [], [], []
    for p in range(s):
        d0.append(weight[:, :, 2 * s - p:2 * s + 1].sum(axis=-1))   # taps hitting x[q]
        d1.append(weight[:, :, s - p:2 * s - p].sum(axis=-1))       # taps hitting x[q-1]
        d2.append(weight[:, :, 0:s - p].sum(axis=-1))               # taps hitting x[q-2]
    return jnp.stack([jnp.concatenate(d0, axis=0),
                      jnp.concatenate(d1, axis=0),
                      jnp.concatenate(d2, axis=0)], axis=0)          # (3, s*O, C)


def _vmem_capacity_bytes():
    try:
        cap = int(getattr(pltpu.get_tpu_info(), "vmem_capacity_bytes"))
        if cap > 0:
            return cap
    except Exception:
        pass
    return 64 * 1024 * 1024        # conservative fallback (v7x physical per-TC)


def _vmem_plan(T, C, sO, in_item, out_item, time_tile=None):
    """Pick a lane-dense time tile and an explicit VMEM limit.

    Accounts for the resident weight/bias (double-buffered), the streamed in/out blocks
    (double-buffered), and the in-kernel f32 accumulator / shifted-operand temporaries.
    """
    vmem_cap = _vmem_capacity_bytes()
    resident = 2 * (3 * sO * C * in_item          # folded weight
                    + sO * 128 * 4                # bias, lane-padded
                    + C * 128 * in_item)          # halo chunk
    per_col = (2 * (C * in_item + sO * out_item)  # streamed blocks (double-buffered)
               + 3 * C * in_item                  # x, x_d1, x_d2 values
               + 2 * sO * 4)                      # f32 accumulator + dot temporary
    if T <= 128:
        tt, n_t, hw = T, 1, T                     # single full-width tile
    else:
        max_tt = (T // 128) * 128
        if time_tile is not None:
            tt = max(128, (min(int(time_tile), max_tt) // 128) * 128)
        else:
            budget = int(0.8 * vmem_cap) - resident - (6 << 20)
            tt = max(128, min(budget // per_col if budget > 0 else 128, 1024))
            tt = (tt // 128) * 128
        tt = min(tt, max_tt)
        n_t = -(-T // tt)
        hw = 128
    need = resident + per_col * tt + (8 << 20)
    vmem_limit = int(min(max(need, 16 << 20), int(0.9 * vmem_cap)))
    return tt, n_t, hw, vmem_limit


def upsample1d_forward(x, input_lengths, weight, bias, stride, *,
                       compute_dtype=jnp.bfloat16, out_dtype=None, time_tile=None):
    """x: (B, C, T); weight: (O, C, 2*stride+1); bias: (O,) -> ((B, O, T*stride), lens*stride).

    NOTE: compute_dtype defaults to bf16 (MXU-native, f32 accumulation) -- an explicit,
    documented precision choice vs the f32 PyTorch reference; pass jnp.float32 for exact.
    """
    B, C, T = x.shape
    O, Cw, K = weight.shape
    assert Cw == C and K == 2 * stride + 1
    s = stride
    sO = s * O
    if out_dtype is None:
        out_dtype = x.dtype

    # The in-kernel q-1/q-2 shifts need at least 3 time columns.
    T_work = max(T, 3)
    xc = x.astype(compute_dtype)
    if T_work != T:
        xc = jnp.pad(xc, ((0, 0), (0, 0), (0, T_work - T)))

    in_item = jnp.dtype(compute_dtype).itemsize
    out_item = jnp.dtype(out_dtype).itemsize
    tt, n_t, hw, vmem_limit = _vmem_plan(T_work, C, sO, in_item, out_item, time_tile)
    halo_ratio = tt // hw

    w_fold = _fold_weights(weight, s).astype(compute_dtype)        # (3, s*O, C)
    b2 = jnp.tile(bias.astype(jnp.float32), s).reshape(sO, 1)      # (s*O, 1)

    out_ph = pl.pallas_call(
        _poly_conv_kernel,
        out_shape=jax.ShapeDtypeStruct((B, sO, T_work), out_dtype),
        grid=(B, n_t),
        in_specs=[
            # streamed activations
            pl.BlockSpec((1, C, tt), lambda b, t: (b, 0, t)),
            # 128-wide halo chunk ending where this tile starts (clamped at t==0; the
            # kernel zeroes it there, matching the left zero-padding of the conv).
            pl.BlockSpec((1, C, hw),
                         lambda b, t: (b, 0, jnp.maximum(t * halo_ratio - 1, 0))),
            # resident folded weight + bias (constant index map)
            pl.BlockSpec((3, sO, C), lambda b, t: (0, 0, 0)),
            pl.BlockSpec((sO, 1), lambda b, t: (0, 0)),
        ],
        out_specs=pl.BlockSpec((1, sO, tt), lambda b, t: (b, 0, t)),
        compiler_params=pltpu.CompilerParams(
            dimension_semantics=("parallel", "parallel"),
            vmem_limit_bytes=vmem_limit),
    )(xc, xc, w_fold, b2)

    # Phase-major (B, s*O, T) -> interleaved (B, O, T*s): layout plumbing in XLA.
    # TODO(synk): a downstream consumer that accepts the phase-major layout (or an
    # in-kernel strided-lane interleave) would remove this final HBM transpose pass.
    out = out_ph[:, :, :T].reshape(B, s, O, T)
    out = jnp.transpose(out, (0, 2, 3, 1)).reshape(B, O, T * s)
    return out, input_lengths * s


def _reference(x, input_lengths, weight, bias, stride):
    # Pure-JAX reference mirroring the PyTorch forward (f32 throughout).
    x_up = jnp.repeat(x, stride, axis=-1)                       # nearest, integer scale
    x_pad = jnp.pad(x_up, ((0, 0), (0, 0), (2 * stride, 0)))    # F.pad (left)
    out = lax.conv_general_dilated(
        x_pad, weight, window_strides=(1,), padding="VALID",
        dimension_numbers=("NCH", "OIH", "NCH"),
        precision=lax.Precision.HIGHEST)
    out = out + bias[None, :, None]
    return out, input_lengths * stride


if __name__ == "__main__":
    base_key = jax.random.PRNGKey(0)

    def run_case(idx, B, C, O, T, stride, compute_dtype, time_tile, rtol, atol):
        key = jax.random.fold_in(base_key, idx)
        kx, kw, kb = jax.random.split(key, 3)
        x = jax.random.normal(kx, (B, C, T), dtype=jnp.float32)
        weight = jax.random.normal(kw, (O, C, 2 * stride + 1), dtype=jnp.float32) * 0.1
        bias = jax.random.normal(kb, (O,), dtype=jnp.float32) * 0.1
        input_lengths = jnp.full((B,), T, dtype=jnp.int32) - jnp.arange(B, dtype=jnp.int32)

        out, out_lens = upsample1d_forward(
            x, input_lengths, weight, bias, stride,
            compute_dtype=compute_dtype, time_tile=time_tile)
        out = jax.block_until_ready(out)
        out_lens = jax.block_until_ready(out_lens)

        ref_out, ref_lens = _reference(x, input_lengths, weight, bias, stride)
        assert out.shape == (B, O, T * stride), out.shape
        err = float(jnp.max(jnp.abs(out.astype(jnp.float32) - ref_out)))
        assert jnp.allclose(out.astype(jnp.float32), ref_out, rtol=rtol, atol=atol), \
            (out.shape, err)
        assert jnp.array_equal(out_lens, ref_lens)

    # Exact f32 MXU path, single full-width tile (small shapes).
    run_case(0, B=2, C=4, O=8, T=16, stride=2, compute_dtype=jnp.float32,
             time_tile=None, rtol=1e-5, atol=1e-5)
    # Production bf16 MXU path (f32 accumulation) -- looser tolerance.
    run_case(1, B=2, C=4, O=8, T=16, stride=2, compute_dtype=jnp.bfloat16,
             time_tile=None, rtol=3e-2, atol=3e-2)
    # Multi-tile time grid: halo handoff across tiles + non-divisible tail (320 = 2*128+64).
    run_case(2, B=2, C=4, O=8, T=320, stride=2, compute_dtype=jnp.float32,
             time_tile=128, rtol=1e-5, atol=1e-5)
    # Different stride to exercise the general polyphase weight folding.
    run_case(3, B=1, C=4, O=6, T=12, stride=3, compute_dtype=jnp.float32,
             time_tile=None, rtol=1e-5, atol=1e-5)

    print("KERNEL_OK")
</pallas_src>

<mosaic_0001>
module attributes {stable_mosaic.version = 11 : i64} {
  func.func @_poly_conv_kernel(%arg0: i32, %arg1: i32, %arg2: memref<1x4x16xf32, #tpu.memory_space<vmem>>, %arg3: memref<1x4x16xf32, #tpu.memory_space<vmem>>, %arg4: memref<3x16x4xf32, #tpu.memory_space<vmem>>, %arg5: memref<16x1xf32, #tpu.memory_space<vmem>>, %arg6: memref<1x16x16xf32, #tpu.memory_space<vmem>>) attributes {dimension_semantics = [#tpu.dimension_semantics<parallel>, #tpu.dimension_semantics<parallel>], iteration_bounds = array<i64: 2, 1>, scalar_prefetch = 0 : i64, scratch_operands = 0 : i64, tpu.core_type = #tpu.core_type<tc>, window_params = [{transform_indices = @transform_0, window_bounds = array<i64: 1, 4, 16>}, {transform_indices = @transform_1, window_bounds = array<i64: 1, 4, 16>}, {pipeline_mode = #tpu.pipeline_mode<synchronous>, transform_indices = @transform_2, window_bounds = array<i64: 3, 16, 4>}, {pipeline_mode = #tpu.pipeline_mode<synchronous>, transform_indices = @transform_3, window_bounds = array<i64: 16, 1>}, {transform_indices = @transform_4, window_bounds = array<i64: 1, 16, 16>}]} {
    %c0 = arith.constant 0 : index
    %c0_0 = arith.constant 0 : index
    %c0_1 = arith.constant 0 : index
    %0 = vector.load %arg2[%c0, %c0_0, %c0_1] : memref<1x4x16xf32, #tpu.memory_space<vmem>>, vector<1x4x16xf32>
    %1 = vector.shape_cast %0 : vector<1x4x16xf32> to vector<4x16xf32>
    %c0_2 = arith.constant 0 : index
    %c0_3 = arith.constant 0 : index
    %c0_4 = arith.constant 0 : index
    %2 = vector.load %arg3[%c0_2, %c0_3, %c0_4] : memref<1x4x16xf32, #tpu.memory_space<vmem>>, vector<1x4x16xf32>
    %3 = vector.shape_cast %2 : vector<1x4x16xf32> to vector<4x16xf32>
    %4 = vector.extract_strided_slice %3 {offsets = [0, 14], sizes = [4, 2], strides = [1, 1]} : vector<4x16xf32> to vector<4x2xf32>
    %c0_i32 = arith.constant 0 : i32
    %5 = arith.cmpi sgt, %arg1, %c0_i32 : i32
    %cst = arith.constant 0.000000e+00 : f32
    %6 = vector.broadcast %cst : f32 to vector<4x2xf32>
    %7 = arith.select %5, %4, %6 : vector<4x2xf32>
    %8 = vector.extract_strided_slice %7 {offsets = [0, 1], sizes = [4, 1], strides = [1, 1]} : vector<4x2xf32> to vector<4x1xf32>
    %9 = vector.extract_strided_slice %1 {offsets = [0, 0], sizes = [4, 15], strides = [1, 1]} : vector<4x16xf32> to vector<4x15xf32>
    %10 = tpu.concatenate %8, %9 in 1 : vector<4x1xf32>, vector<4x15xf32> -> vector<4x16xf32>
    %11 = vector.extract_strided_slice %1 {offsets = [0, 0], sizes = [4, 14], strides = [1, 1]} : vector<4x16xf32> to vector<4x14xf32>
    %12 = tpu.concatenate %7, %11 in 1 : vector<4x2xf32>, vector<4x14xf32> -> vector<4x16xf32>
    %c0_5 = arith.constant 0 : index
    %c0_6 = arith.constant 0 : index
    %c0_7 = arith.constant 0 : index
    %13 = vector.load %arg4[%c0_5, %c0_6, %c0_7] : memref<3x16x4xf32, #tpu.memory_space<vmem>>, vector<1x16x4xf32>
    %14 = vector.shape_cast %13 : vector<1x16x4xf32> to vector<16x4xf32>
    %cst_8 = arith.constant dense<0.000000e+00> : vector<16x16xf32>
    %15 = tpu.matmul %14, %1, %cst_8 {dimension_numbers = #tpu.dot_dimension_numbers<[1], [0], [0], [1], [0, 0, 1, 1], [], []>} : vector<16x4xf32>, vector<4x16xf32>, vector<16x16xf32> -> vector<16x16xf32>
    %c1 = arith.constant 1 : index
    %c0_9 = arith.constant 0 : index
    %c0_10 = arith.constant 0 : index
    %16 = vector.load %arg4[%c1, %c0_9, %c0_10] : memref<3x16x4xf32, #tpu.memory_space<vmem>>, vector<1x16x4xf32>
    %17 = vector.shape_cast %16 : vector<1x16x4xf32> to vector<16x4xf32>
    %cst_11 = arith.constant dense<0.000000e+00> : vector<16x16xf32>
    %18 = tpu.matmul %17, %10, %cst_11 {dimension_numbers = #tpu.dot_dimension_numbers<[1], [0], [0], [1], [0, 0, 1, 1], [], []>} : vector<16x4xf32>, vector<4x16xf32>, vector<16x16xf32> -> vector<16x16xf32>
    %19 = arith.addf %15, %18 : vector<16x16xf32>
    %c2 = arith.constant 2 : index
    %c0_12 = arith.constant 0 : index
    %c0_13 = arith.constant 0 : index
    %20 = vector.load %arg4[%c2, %c0_12, %c0_13] : memref<3x16x4xf32, #tpu.memory_space<vmem>>, vector<1x16x4xf32>
    %21 = vector.shape_cast %20 : vector<1x16x4xf32> to vector<16x4xf32>
    %cst_14 = arith.constant dense<0.000000e+00> : vector<16x16xf32>
    %22 = tpu.matmul %21, %12, %cst_14 {dimension_numbers = #tpu.dot_dimension_numbers<[1], [0], [0], [1], [0, 0, 1, 1], [], []>} : vector<16x4xf32>, vector<4x16xf32>, vector<16x16xf32> -> vector<16x16xf32>
    %23 = arith.addf %19, %22 : vector<16x16xf32>
    %c0_15 = arith.constant 0 : index
    %c0_16 = arith.constant 0 : index
    %24 = vector.load %arg5[%c0_15, %c0_16] : memref<16x1xf32, #tpu.memory_space<vmem>>, vector<16x1xf32>
    %25 = vector.broadcast %24 : vector<16x1xf32> to vector<16x16xf32>
    %26 = arith.addf %23, %25 : vector<16x16xf32>
    %c0_17 = arith.constant 0 : index
    %c0_18 = arith.constant 0 : index
    %c0_19 = arith.constant 0 : index
    %27 = vector.load %arg6[%c0_17, %c0_18, %c0_19] : memref<1x16x16xf32, #tpu.memory_space<vmem>>, vector<1x16x16xf32>
    %28 = vector.shape_cast %27 : vector<1x16x16xf32> to vector<16x16xf32>
    %29 = vector.shape_cast %26 : vector<16x16xf32> to vector<1x16x16xf32>
    tpu.vector_store %arg6[%c0_17, %c0_18, %c0_19], %29 {strides = array<i32>} : memref<1x16x16xf32, #tpu.memory_space<vmem>>, vector<1x16x16xf32>,
    return
  }
  func.func @transform_0(%arg0: i32, %arg1: i32) -> (i32, i32, i32) {
    %c0_i32 = arith.constant 0 : i32
    %c0_i32_0 = arith.constant 0 : i32
    return %arg0, %c0_i32, %arg1 : i32, i32, i32
  }
  func.func @transform_1(%arg0: i32, %arg1: i32) -> (i32, i32, i32) {
    %c1_i32 = arith.constant 1 : i32
    %0 = arith.muli %arg1, %c1_i32 : i32
    %c1_i32_0 = arith.constant 1 : i32
    %1 = arith.subi %0, %c1_i32_0 : i32
    %c0_i32 = arith.constant 0 : i32
    %2 = arith.maxsi %1, %c0_i32 : i32
    %c0_i32_1 = arith.constant 0 : i32
    %c0_i32_2 = arith.constant 0 : i32
    return %arg0, %c0_i32_1, %2 : i32, i32, i32
  }
  func.func @transform_2(%arg0: i32, %arg1: i32) -> (i32, i32, i32) {
    %c0_i32 = arith.constant 0 : i32
    %c0_i32_0 = arith.constant 0 : i32
    %c0_i32_1 = arith.constant 0 : i32
    %c0_i32_2 = arith.constant 0 : i32
    return %c0_i32, %c0_i32_0, %c0_i32_1 : i32, i32, i32
  }
  func.func @transform_3(%arg0: i32, %arg1: i32) -> (i32, i32) {
    %c0_i32 = arith.constant 0 : i32
    %c0_i32_0 = arith.constant 0 : i32
    %c0_i32_1 = arith.constant 0 : i32
    return %c0_i32, %c0_i32_0 : i32, i32
  }
  func.func @transform_4(%arg0: i32, %arg1: i32) -> (i32, i32, i32) {
    %c0_i32 = arith.constant 0 : i32
    %c0_i32_0 = arith.constant 0 : i32
    return %arg0, %c0_i32, %arg1 : i32, i32, i32
  }
}

</mosaic_0001>

<bundles_post_ra>
// kernel: tpu_custom_call.1
= control target key start
LH: loop header
LB: loop body
LE: loop exit
PB: predicated region body
PF: predicated region fallthrough
CT: control target
= control target key end

     0   :  { %9 = vsyncpa [#allocation3], 0  ;;  %s862_s0 = inlined_call_operand.vmem [shape: f32[2,4,16], index: 0, kind: input, shape index: {}]   ;;  %s863_s1 = inlined_call_operand.vmem [shape: f32[2,4,16], index: 1, kind: input, shape index: {}]   ;;  %s864_s2 = inlined_call_operand.vmem [shape: f32[3,16,4], index: 2, kind: input, shape index: {}]   ;;  %s865_s3 = inlined_call_operand.vmem [shape: f32[16,1], index: 3, kind: input, shape index: {}]   ;;  %s866_s4 = inlined_call_operand.hbm [shape: f32[2,16,16], index: 4, kind: output, shape index: {}]  }
   0x1   :  { %11 = vsyncpa [#allocation3 + $0x1], 0  ;;  %s729_s15 = smov 0   ;;  %s731_s16 = smov 0  }
   0x2   :  { %s733_s17 = smov 0   ;;  %s735_s18 = smov 0  }
   0x3   :  { %s737_s1 = smov 0   ;;  %s739_s19 = smov 0  }
   0x4 LB: > { %s523_s20 = sadd.s32 4294967295, %s694_s19   ;;  %s524_s21 = sadd.s32 4294967294, %s694_s19   ;;  %s694_s19 = sphi %s739_s19, %s17_s19   ;;  %s690_s1 = sphi %s737_s1, %s873_s1   ;;  %s686_s18 = sphi %s735_s18, %s872_s18   ;;  %s682_s17 = sphi %s733_s17, %s871_s17   ;;  %s678_s16 = sphi %s731_s16, %s870_s16   ;;  %s674_s15 = sphi %s729_s15, %s869_s15  }
   0x5   : > { %s29_s22 = sadd.s32 1, %s690_s1  ;;  %s142_s23 = sadd.s32 1, %s682_s17 }
   0x6   : > { %p31_p0 = scmp.ge.s32.totalorder %s29_s22, 2  ;;  %p152_p1 = scmp.ne.s32.totalorder %s682_s17, %s678_s16 }
   0x7   : > { %p153_p2 = scmp.eq.s32.totalorder %s523_s20, 1  ;;  %p158_p3 = scmp.ne.s32.totalorder %s678_s16, %s674_s15 }
   0x8   : > { %s875_s22 = smov (%p31_p0, %s29_s22), 0  ;;  %p159_p5 = scmp.eq.s32.totalorder %s524_s21, 1 }
   0x9   : > { %p769_p4 = por %p153_p2, %p152_p1  ;;  %s137_s25 = ssub.s32 %s690_s1, %s875_s22 }
   0xa   : > { %p527_p6 = scmp.ge.s32.totalorder %s694_s19, 1  ;;  %p140_p7 = scmp.eq.s32.totalorder %s137_s25, 0 }
   0xb   : > { %p776_p8 = por %p159_p5, %p158_p3  ;;  %p209_p9 = scmp.lt.s32.totalorder %s694_s19, 3 }
   0xc   : > { %s782_s27 = scalar_select %p140_p7, %s682_s17, %s142_s23  }
   0xd   : > { %p210_p10 = pnand %p527_p6, %p209_p9 }
   0xe   : > { %s697_s28 = smov (!%p210_p10), 113   ;;  %s698_s29 = smov (!%p210_p10), 114  }
   0xf   : > { %213 = sbr.rel (%p210_p10) target bundleno = 295 (0x127), region = 36  ;;  %p247_p11 = scmp.lt.s32.totalorder (!%p210_p10), %s686_s18, 1 }
  0x10   : > { %s699_s9 = smov (!%p210_p10), 1   ;;  %s700_s10 = smov (!%p210_p10), 2  }
  0x11   : > { %s549_s12 = sshll.u32 (!%p210_p10), %s686_s18, 4  ;;  %s636_s6 = scalar_lea.hbm (!%p210_p10), %s866_s4, 32 }
  0x12   : > { %s429_s20 = scalar_lea.hbm (!%p210_p10), %s866_s4, %s549_s12 }
  0x13   : > { %s432_s25 = sshll.u32 (!%p210_p10), %s429_s20, 4  ;;  %s433_s25 = int_to_ptr.hbm [resolvable:$true] %s432_s25 }
  0x14   : > { %v696_v0 = vmov 0.0   ;;  %s248_s30 = scalar_select %p247_p11, %s686_s18, 1  ;;  %vm304_vm0 = vcmask 1043456   ;;  %vm297_vm1 = vcmask 31744   ;;  %v292_v2 = vld [vmem:[%s864_s2] sm:$0xff]  ;;  %v293_v3 = vld [vmem:[%s864_s2 + $0x8] sm:$0xff] }
  0x15   : > { %275 = vrot.lane.b32.xlu1 %v696_v0, %s697_s28  ;;  %284 = vrot.lane.b32.xlu0 %v696_v0, %s698_s29  ;;  %v399_v4 = vld [vmem:[%s865_s3] sm:$0xff]  ;;  %v701_v5 = vmov 0   ;;  %v400_v6 = vld [vmem:[%s865_s3 + $0x8] sm:$0xff]  ;;  %vm282_vm2 = vcmask 7168   ;;  %vm290_vm3 = vcmask 15360   ;;  %vm413_vm4 = vcmask 130048  }
  0x16   : > { %s529_s5 = sshll.u32 %s248_s30, 2  ;;  %614 = vset.pattern.permute.xlu2 %v701_v5  ;;  %615 = vset.pattern.permute.xlu0 %v701_v5  ;;  %v531_v11 = vld [vmem:[%s864_s2 + $0x10] sm:$0xff]  ;;  %v539_v14 = vld [vmem:[%s864_s2 + $0x20] sm:$0xff]  ;;  %v532_v15 = vld [vmem:[%s864_s2 + $0x18] sm:$0xff]  ;;  %s630_s28 = sshra.s32 %s433_s25, 4  ;;  %s631_s28 = int_to_ptr.hbm [resolvable:$true] %s630_s28 }
  0x17   : > { %s253_s8 = scalar_lea.vmem %s862_s0, %s529_s5  ;;  %403 = vperm.xlu2 %614, %v399_v4   ;;  %v540_v16 = vld [vmem:[%s864_s2 + $0x28] sm:$0xff]  ;;  %s632_s29 = scalar_lea.hbm %s631_s28, 16 }
  0x18   : > { %v267_v1 = vld [vmem:[%s253_s8] sm:$0xf]  ;;  %p633_p12 = scmp.ne.s32.totalorder %s631_s28, %s632_s29  ;;  %p637_p1 = scmp.lt.s32.totalorder %s631_s28, %s866_s4 }
  0x19   : > { %536 = vmatpush.msk.msra.mxu1 %vm304_vm0, %v267_v1  ;;  %p638_p2 = scmp.lt.s32.totalorder %s636_s6, %s632_s29 }
  0x1a   : > { %537 = vmatmul.msk.f32.vlgmr.msra.gmra.mxu1 %vm297_vm1, %v292_v2  ;;  %p634_p13 = pnand %p633_p12, %p769_p4 }
  0x1b   : > { %p639_p3 = por %p638_p2, %p637_p1 }
  0x1c   : > { %p635_p0 = pneg %p634_p13 }
  0x1d   : > { %279 = vrot.lane.b32.xlu1 %v267_v1, %s699_s9  ;;  %287 = vrot.lane.b32.xlu0 %v267_v1, %s700_s10  ;;  %s244_s10 = sand.u32 1, %s678_s16  }
  0x1e   : > { %s528_s11 = sshll.u32 %s244_s10, 4  ;;  %s417_s18 = scalar_lea.sflag [#allocation3], %s244_s10 }
  0x1f   : > { %408 = vperm.xlu2 %614, %v400_v6   ;;  %s246_s21 = scalar_lea.vmem [#allocation2], %s528_s11  ;;  %p640_p5 = pnand %p639_p3, %p635_p0 }
  0x20   : > { %s430_s23 = sshll.u32 %s246_s21, 4  ;;  %s431_s23 = int_to_ptr.vmem [resolvable:$true] %s430_s23 }
  0x22   : > { %538 = vmatmul.msk.f32.gmra.mxu1 %vm297_vm1, %v293_v3 }
  0x71   : > { %v404_v20 = vpop.permute.xlu2 %403 }
  0x79   : > { %v409_v29 = vpop.permute.xlu2 %408 }
  0x87   : > { %v276_v7 = vpop.permute.xlu1 %275  ;;  %v285_v8 = vpop.permute.xlu0 %284 }
  0x8f   : > { %v280_v9 = vpop.permute.xlu1 %279  ;;  %v288_v10 = vpop.permute.xlu0 %287 }
  0x90   : > { %v283_v12 = vsel %vm282_vm2, %v276_v7, %v280_v9  ;;  %v291_v13 = vsel %vm290_vm3, %v285_v8, %v288_v10 }
  0x91   : > { %533 = vmatpush.msk.msra.mxu0 %vm304_vm0, %v283_v12  ;;  %550 = vmatpush.msk.msra.mxu3 %vm304_vm0, %v283_v12 }
  0x92   : > { %541 = vmatpush.msk.msra.mxu2 %vm304_vm0, %v291_v13  ;;  %534 = vmatmul.msk.f32.vlgmr.msra.gmra.mxu0 %vm297_vm1, %v531_v11 }
  0x93   : > { %542 = vmatmul.msk.f32.vlgmr.msra.gmra.mxu2 %vm297_vm1, %v539_v14  ;;  %535 = vmatmul.msk.f32.vlgmr.msra.gmra.mxu3 %vm297_vm1, %v532_v15 }
  0x97   : > { %v356_v17 = vpop.f32.mrf.mxu1 }
  0x9b   : > { %543 = vmatmul.msk.f32.gmra.mxu2 %vm297_vm1, %v540_v16 }
  0x9f   : > { %v359_v24 = vpop.f32.mrf.mxu1 }
 0x10f   : > { %v325_v18 = vpop.f32.mrf.mxu0 }
 0x110   : > { %v357_v19 = vadd.f32 %v356_v17, %v325_v18 }
 0x116   : > { %v391_v21 = vpop.f32.mrf.mxu2  ;;  %v328_v23 = vpop.f32.mrf.mxu3 }
 0x117   : > { %v397_v22 = vadd.f32 %v391_v21, %v357_v19  ;;  %v360_v26 = vadd.f32 %v359_v24, %v328_v23 }
 0x119   : > { %v411_v25 = vadd.f32 %v404_v20, %v397_v22 }
 0x11b   : > { %414 = vst.msk [vmem:[%s246_s21] sm:$0xff] %vm413_vm4, %v411_v25 }
 0x11e   : > { %v394_v27 = vpop.f32.mrf.mxu2 }
 0x11f   : > { %v398_v28 = vadd.f32 %v394_v27, %v360_v26 }
 0x121   : > { %v412_v30 = vadd.f32 %v409_v29, %v398_v28 }
 0x123   : > { %415 = vst.msk [vmem:[%s246_s21 + $0x8] sm:$0xff] %vm413_vm4, %v412_v30 }
 0x124   : > { %643 = shalt.err (!%p640_p5)
}
 0x125   : > { %s702_s9 = smov 128   ;;  %s703_s10 = smov 8  }
 0x126   : > { %551 = dma.vmem_to_hbm [thread:$0]  (%p769_p4), %s431_s23, 256, %s433_s25, %s417_s18, %s702_s9, %s702_s9, %s703_s10  }
 0x127 PF: > { %p557_p6 = scmp.ge.s32.totalorder %s694_s19, 2  ;;  %s447_s11 = sand.u32 1, %s674_s15  }
 0x128   : > { %s448_s12 = scalar_lea.sflag [#allocation3], %s447_s11 }
 0x129   : > { %p554_p7 = pnand %p557_p6, %p776_p8 }
 0x12b   : > { %p555_p9 = pneg %p554_p7 }
 0x12d   : > { %669 = dma.done.wait (%p555_p9), %s448_s12, 256  }
 0x12e   : > { %671 = vsyncadd (%p555_p9), %s448_s12, 4294967040  ;;  %s17_s19 = sadd.s32 1, %s694_s19   ;;  %s869_s15 = smov %s678_s16 }
 0x12f   : > { %p14_p10 = scmp.ge.s32.totalorder %s17_s19, 4   ;;  %s870_s16 = smov %s682_s17 }
 0x130   : > { %s871_s17 = smov %s782_s27  ;;  %s872_s18 = smov %s690_s1 }
 0x131   : > { %s873_s1 = smov %s875_s22  ;;  %16 = sbr.rel (!%p14_p10) target bundleno = 4 (0x4), region = 76 }
 0x136   :  { %454 = vsyncpa [#allocation3], 1 }
 0x137   :  { %456 = vsyncpa [#allocation3 + $0x1], 1 }

</bundles_post_ra>
